<compile_context>
chip_gen: v7x
topology: tpu7x:2x2x1
jax: 0.10.0
libtpu: 0.0.40
codegen_flags: <defaults>
</compile_context>

<pallas_src>
import functools

import jax
import jax.numpy as jnp
from jax.experimental import pallas as pl
from jax.experimental.pallas import tpu as pltpu

EPS = 1e-12                      # F.normalize default eps
_VMEM_BUDGET = 24 * 1024 * 1024  # stay under v7x's 32 MiB default scoped VMEM
_VMEM_LIMIT = 32 * 1024 * 1024   # explicit scoped-VMEM limit (safe on all gens)
_PATH_A_MAX_D = 8192             # weight kept VMEM-resident up to this feature size


def _round_up(n, m):
    return ((n + m - 1) // m) * m


# ---------------------------------------------------------------------------
# Path A: single K step — weight VMEM-resident (constant index map), no scratch.
# ---------------------------------------------------------------------------
def _kernel_resident(x_ref, w_ref, o_ref, *, inv_temp, mxu_dtype):
    x = x_ref[...].astype(jnp.float32)
    # (x/||x||) @ W == (x @ W) / ||x||  (normalization is a per-row scale).
    sumsq = jnp.sum(x * x, axis=-1, keepdims=True)
    acc = jnp.dot(x.astype(mxu_dtype), w_ref[...],
                  preferred_element_type=jnp.float32)
    # 1/max(||x||, eps) == rsqrt(max(sum(x^2), eps^2)); zero rows give acc == 0.
    inv_norm = jax.lax.rsqrt(jnp.maximum(sumsq, EPS * EPS))
    o_ref[...] = (acc * (inv_norm * inv_temp)).astype(o_ref.dtype)


# ---------------------------------------------------------------------------
# Path B: K-tiled accumulation for very large feature dims.
# ---------------------------------------------------------------------------
def _kernel_ktiled(x_ref, w_ref, o_ref, acc_ref, sq_ref, *,
                   inv_temp, mxu_dtype, d_total, tk):
    k = pl.program_id(1)
    x = x_ref[...].astype(jnp.float32)
    if d_total % tk != 0:
        # Ragged K tail: mask garbage lanes so they pollute neither the
        # sum-of-squares nor the matmul (weight rows past D are zero-padded).
        col = k * tk + jax.lax.broadcasted_iota(jnp.int32, x.shape, 1)
        x = jnp.where(col < d_total, x, 0.0)

    part = jnp.dot(x.astype(mxu_dtype), w_ref[...],
                   preferred_element_type=jnp.float32)
    ssq = jnp.sum(x * x, axis=-1, keepdims=True)

    @pl.when(k == 0)
    def _():                      # first K step writes (skip zero-init pass)
        acc_ref[...] = part
        sq_ref[...] = ssq

    @pl.when(k != 0)
    def _():
        acc_ref[...] += part
        sq_ref[...] += ssq

    @pl.when(k == pl.num_programs(1) - 1)
    def _():
        inv_norm = jax.lax.rsqrt(jnp.maximum(sq_ref[...], EPS * EPS))
        o_ref[...] = (acc_ref[...] * (inv_norm * inv_temp)).astype(o_ref.dtype)


def _pick_tm(B, tm_default, fits):
    rows = _round_up(max(B, 1), 8)
    if B <= 8:
        cap = rows
    else:
        # v7x has 2 TensorCores: keep >= 2 row blocks so the "parallel" grid
        # axis can shard across both cores.
        cap = _round_up(pl.cdiv(B, 2), 8)
    tm = min(_round_up(tm_default, 8), cap)
    while tm > 8 and not fits(tm):
        tm = max(8, _round_up(tm // 2, 8))
    return tm


def res_classifier_mme_forward(x, weight, temp=0.05, *,
                               mxu_dtype=jnp.bfloat16, out_dtype=jnp.float32,
                               tm=512, tk=None, max_resident_d=_PATH_A_MAX_D):
    """Forward of ResClassifier_MME: F.normalize(x) @ weight.T / temp.

    x: (B, D) activations.  weight: (C, D) nn.Linear weight (no bias).
    mxu_dtype=bf16 (default) halves the weight's HBM/VMEM bytes; accumulation
    and normalization math stay in f32.  Use jnp.float32 for exact numerics.
    out_dtype can be set to bf16 to halve output writeback if downstream allows.
    """
    B, D = x.shape
    C, D2 = weight.shape
    assert D == D2, "weight must be (num_classes, input_size)"

    Cp = _round_up(C, 128)                  # lane-dense output width
    xb = jnp.dtype(x.dtype).itemsize
    wb = jnp.dtype(mxu_dtype).itemsize
    ob = jnp.dtype(out_dtype).itemsize
    inv_temp = 1.0 / float(temp)

    resident = (tk is None and D <= max_resident_d
                and 2 * D * Cp * wb <= _VMEM_BUDGET // 2)

    if resident:
        # ---------------- Path A: resident weight, 1-D grid ------------------
        def fits(tm_):
            return (2 * tm_ * D * xb        # x double buffer
                    + 2 * D * Cp * wb       # weight (constant index map)
                    + 2 * tm_ * Cp * ob     # output double buffer
                    ) <= _VMEM_BUDGET

        tm = _pick_tm(B, tm, fits)
        # Once-off transpose / cast / C-pad of the weight.
        # TODO(synk): cache this per parameter update instead of per forward.
        wt = jnp.pad(weight.T.astype(mxu_dtype), ((0, 0), (0, Cp - C)))

        kernel = functools.partial(_kernel_resident, inv_temp=inv_temp,
                                   mxu_dtype=mxu_dtype)
        out = pl.pallas_call(
            kernel,
            out_shape=jax.ShapeDtypeStruct((B, Cp), out_dtype),
            grid_spec=pltpu.PrefetchScalarGridSpec(
                num_scalar_prefetch=0,
                grid=(pl.cdiv(B, tm),),
                in_specs=[
                    pl.BlockSpec((tm, D), lambda i: (i, 0)),   # x row block
                    pl.BlockSpec((D, Cp), lambda i: (0, 0)),   # resident weight
                ],
                out_specs=pl.BlockSpec((tm, Cp), lambda i: (i, 0)),
            ),
            compiler_params=pltpu.CompilerParams(
                dimension_semantics=("parallel",),
                vmem_limit_bytes=_VMEM_LIMIT,
            ),
        )(x, wt)
    else:
        # ---------------- Path B: K-tiled accumulation (large D) -------------
        tk = min(_round_up(D, 128), 2048) if tk is None else int(tk)
        assert tk % 128 == 0
        Dp = _round_up(D, tk)

        def fits(tm_):
            return (2 * tm_ * tk * xb       # x double buffer
                    + 2 * tk * Cp * wb      # weight K-slice double buffer
                    + 2 * tm_ * Cp * ob     # output double buffer
                    + tm_ * Cp * 4          # f32 accumulator scratch
                    + tm_ * 128 * 4         # sum-of-squares scratch (padded)
                    ) <= _VMEM_BUDGET

        tm = _pick_tm(B, tm, fits)
        # Weight zero-padded along D so masked-zero ragged lanes meet zero rows.
        # TODO(synk): cache this per parameter update instead of per forward.
        wt = jnp.pad(weight.T.astype(mxu_dtype), ((0, Dp - D), (0, Cp - C)))

        kernel = functools.partial(_kernel_ktiled, inv_temp=inv_temp,
                                   mxu_dtype=mxu_dtype, d_total=D, tk=tk)
        out = pl.pallas_call(
            kernel,
            out_shape=jax.ShapeDtypeStruct((B, Cp), out_dtype),
            grid_spec=pltpu.PrefetchScalarGridSpec(
                num_scalar_prefetch=0,
                grid=(pl.cdiv(B, tm), Dp // tk),
                in_specs=[
                    pl.BlockSpec((tm, tk), lambda i, k: (i, k)),  # x K slice
                    pl.BlockSpec((tk, Cp), lambda i, k: (k, 0)),  # weight K slice
                ],
                out_specs=pl.BlockSpec((tm, Cp), lambda i, k: (i, 0)),
                scratch_shapes=[
                    pltpu.VMEM((tm, Cp), jnp.float32),   # matmul accumulator
                    pltpu.VMEM((tm, 1), jnp.float32),    # running sum of squares
                ],
            ),
            compiler_params=pltpu.CompilerParams(
                dimension_semantics=("parallel", "arbitrary"),
                vmem_limit_bytes=_VMEM_LIMIT,
            ),
        )(x, wt)

    # Batch dim is never padded; only the cheap column slice remains.
    return out[:, :C] if Cp != C else out


def reference_forward(x, weight, temp=0.05):
    norm = jnp.sqrt(jnp.sum(x * x, axis=-1, keepdims=True))
    xn = x / jnp.maximum(norm, EPS)
    return (xn @ weight.T) / temp


# TODO(synk): forward(reverse=True) gradient-reversal (backward-pass construct),
# the unused dropout flag, and weight_norm()/weights_init() (init-time parameter
# ops) are not part of the default forward and are not implemented in the kernel.

if __name__ == "__main__":
    temp = 0.05
    key = jax.random.PRNGKey(0)

    # 1) Small module-consistent shapes; exact f32 path (resident weight, 1 block).
    B, D, C = 8, 256, 12
    k1, k2, key = jax.random.split(key, 3)
    x = jax.random.normal(k1, (B, D), dtype=jnp.float32)
    w = 0.1 * jax.random.normal(k2, (C, D), dtype=jnp.float32)   # weights_init std=0.1
    ref = reference_forward(x, w, temp)
    out = jax.block_until_ready(
        res_classifier_mme_forward(x, w, temp, mxu_dtype=jnp.float32))
    assert out.shape == (B, C)
    assert jnp.allclose(out, ref, atol=1e-3, rtol=1e-3), "f32 resident path mismatch"

    # 2) Ragged batch + module-default input_size; bf16 weight (default), resident path.
    B, D, C = 20, 2048, 12
    k1, k2, key = jax.random.split(key, 3)
    x = jax.random.normal(k1, (B, D), dtype=jnp.float32)
    w = 0.1 * jax.random.normal(k2, (C, D), dtype=jnp.float32)
    ref = reference_forward(x, w, temp)
    out = jax.block_until_ready(res_classifier_mme_forward(x, w, temp))
    assert out.shape == (B, C)
    assert jnp.allclose(out, ref, atol=2.5e-1, rtol=5e-2), "bf16 resident path mismatch"

    # 3) Forced K-tiled path with a ragged K tail (masked in-kernel); exact f32.
    B, D, C = 16, 1920, 12
    k1, k2, key = jax.random.split(key, 3)
    x = jax.random.normal(k1, (B, D), dtype=jnp.float32)
    w = 0.1 * jax.random.normal(k2, (C, D), dtype=jnp.float32)
    ref = reference_forward(x, w, temp)
    out = jax.block_until_ready(
        res_classifier_mme_forward(x, w, temp, mxu_dtype=jnp.float32,
                                   max_resident_d=0, tk=512))
    assert out.shape == (B, C)
    assert jnp.allclose(out, ref, atol=1e-3, rtol=1e-3), "f32 K-tiled path mismatch"

    print("KERNEL_OK")
</pallas_src>

<mosaic_0001>
module attributes {stable_mosaic.version = 11 : i64} {
  func.func @_kernel_resident(%arg0: i32, %arg1: memref<8x256xf32, #tpu.memory_space<vmem>>, %arg2: memref<256x128xf32, #tpu.memory_space<vmem>>, %arg3: memref<8x128xf32, #tpu.memory_space<vmem>>) attributes {dimension_semantics = [#tpu.dimension_semantics<parallel>], iteration_bounds = array<i64: 1>, scalar_prefetch = 0 : i64, scratch_operands = 0 : i64, tpu.core_type = #tpu.core_type<tc>, window_params = [{transform_indices = @transform_0, window_bounds = array<i64: 8, 256>}, {pipeline_mode = #tpu.pipeline_mode<synchronous>, transform_indices = @transform_1, window_bounds = array<i64: 256, 128>}, {transform_indices = @transform_2, window_bounds = array<i64: 8, 128>}]} {
    %c0 = arith.constant 0 : index
    %c0_0 = arith.constant 0 : index
    %0 = vector.load %arg1[%c0, %c0_0] : memref<8x256xf32, #tpu.memory_space<vmem>>, vector<8x256xf32>
    %1 = arith.mulf %0, %0 : vector<8x256xf32>
    %cst = arith.constant dense<0.000000e+00> : vector<8xf32>
    %2 = vector.multi_reduction <add>, %1, %cst [1] : vector<8x256xf32> to vector<8xf32>
    %3 = vector.shape_cast %2 : vector<8xf32> to vector<8x1xf32>
    %c0_1 = arith.constant 0 : index
    %c0_2 = arith.constant 0 : index
    %4 = vector.load %arg2[%c0_1, %c0_2] : memref<256x128xf32, #tpu.memory_space<vmem>>, vector<256x128xf32>
    %cst_3 = arith.constant dense<0.000000e+00> : vector<8x128xf32>
    %5 = tpu.matmul %0, %4, %cst_3 {dimension_numbers = #tpu.dot_dimension_numbers<[1], [0], [0], [1], [0, 0, 1, 1], [], []>} : vector<8x256xf32>, vector<256x128xf32>, vector<8x128xf32> -> vector<8x128xf32>
    %cst_4 = arith.constant 1.000000e-24 : f32
    %6 = vector.broadcast %cst_4 : f32 to vector<8x1xf32>
    %7 = arith.maximumf %3, %6 : vector<8x1xf32>
    %8 = math.rsqrt %7 : vector<8x1xf32>
    %cst_5 = arith.constant 2.000000e+01 : f32
    %9 = vector.broadcast %cst_5 : f32 to vector<8x1xf32>
    %10 = arith.mulf %8, %9 : vector<8x1xf32>
    %11 = vector.broadcast %10 : vector<8x1xf32> to vector<8x128xf32>
    %12 = arith.mulf %5, %11 : vector<8x128xf32>
    %c0_6 = arith.constant 0 : index
    %c0_7 = arith.constant 0 : index
    %13 = vector.load %arg3[%c0_6, %c0_7] : memref<8x128xf32, #tpu.memory_space<vmem>>, vector<8x128xf32>
    tpu.vector_store %arg3[%c0_6, %c0_7], %12 {strides = array<i32>} : memref<8x128xf32, #tpu.memory_space<vmem>>, vector<8x128xf32>,
    return
  }
  func.func @transform_0(%arg0: i32) -> (i32, i32) {
    %c0_i32 = arith.constant 0 : i32
    %c0_i32_0 = arith.constant 0 : i32
    return %arg0, %c0_i32 : i32, i32
  }
  func.func @transform_1(%arg0: i32) -> (i32, i32) {
    %c0_i32 = arith.constant 0 : i32
    %c0_i32_0 = arith.constant 0 : i32
    %c0_i32_1 = arith.constant 0 : i32
    return %c0_i32, %c0_i32_0 : i32, i32
  }
  func.func @transform_2(%arg0: i32) -> (i32, i32) {
    %c0_i32 = arith.constant 0 : i32
    %c0_i32_0 = arith.constant 0 : i32
    return %arg0, %c0_i32 : i32, i32
  }
}

</mosaic_0001>

<bundles_post_ra>
// kernel: tpu_custom_call.1
= control target key start
LH: loop header
LB: loop body
LE: loop exit
PB: predicated region body
PF: predicated region fallthrough
CT: control target
= control target key end

     0   :  { %7 = vsyncpa [#allocation3], 0  ;;  %s377_s0 = inlined_call_operand.hbm [shape: f32[8,256], index: 0, kind: input, shape index: {}]   ;;  %s378_s1 = inlined_call_operand.hbm [shape: f32[256,128], index: 1, kind: input, shape index: {}]   ;;  %s379_s2 = inlined_call_operand.hbm [shape: f32[8,128], index: 2, kind: output, shape index: {}]  }
   0x1   :  { %8 = vsyncpa [#allocation6], 0 }
   0x2   :  { %9 = vsyncpa [#allocation4], 0  ;;  %s314_s9 = smov [#allocation2]   ;;  %s315_s11 = smov [#allocation5]  }
   0x3   :  { %s16_s10 = sshll.u32 %s314_s9, 4  ;;  %s25_s12 = sshll.u32 %s315_s11, 4  ;;  %s17_s10 = int_to_ptr.vmem [resolvable:$true] %s16_s10  ;;  %s334_s12 = int_to_ptr.vmem [resolvable:$true] %s25_s12 }
   0x4   :  { %s242_s15 = scalar_lea.hbm %s377_s0, 256 }
   0x5   :  { %p243_p0 = scmp.ne.s32.totalorder %s377_s0, %s242_s15  ;;  %p246_p1 = scmp.lt.u32.totalorder %s242_s15, %s377_s0 }
   0x7   :  { %p248_p2 = pnand %p246_p1, %p243_p0 }
   0x9   :  { %251 = shalt.err (!%p248_p2)
}
   0xa   :  { %s252_s20 = scalar_lea.vmem %s17_s10, 256  ;;  %p257_p4 = scmp.lt.s32.totalorder %s17_s10, %s17_s10 }
   0xb   :  { %p253_p3 = scmp.ne.s32.totalorder %s17_s10, %s252_s20  ;;  %p258_p5 = scmp.lt.s32.totalorder %s252_s20, %s252_s20 }
   0xd   :  { %p259_p6 = por %p258_p5, %p257_p4 }
   0xf   :  { %p260_p7 = pnand %p259_p6, %p253_p3 }
  0x11   :  { %263 = shalt.err (!%p260_p7)
}
  0x12   :  { %19 = dma.hbm_to_vmem [thread:$0]  %s377_s0, 256, %s17_s10, [#allocation3]  }
  0x13   :  { %s264_s25 = scalar_lea.hbm %s378_s1, 4096 }
  0x14   :  { %p265_p8 = scmp.ne.s32.totalorder %s378_s1, %s264_s25  ;;  %p268_p9 = scmp.lt.u32.totalorder %s264_s25, %s378_s1 }
  0x16   :  { %p270_p10 = pnand %p268_p9, %p265_p8 }
  0x18   :  { %273 = shalt.err (!%p270_p10)
}
  0x19   :  { %s274_s30 = scalar_lea.vmem %s334_s12, 4096  ;;  %p279_p12 = scmp.lt.s32.totalorder %s334_s12, %s334_s12 }
  0x1a   :  { %p275_p11 = scmp.ne.s32.totalorder %s334_s12, %s274_s30  ;;  %p280_p13 = scmp.lt.s32.totalorder %s274_s30, %s274_s30 }
  0x1c   :  { %p281_p0 = por %p280_p13, %p279_p12 }
  0x1e   :  { %p282_p1 = pnand %p281_p0, %p275_p11 }
  0x20   :  { %285 = shalt.err (!%p282_p1)
}
  0x21   :  { %s316_s0 = smov 128   ;;  %s317_s3 = smov 8  }
  0x22   :  { %31 = dma.hbm_to_vmem [thread:$0]  %s378_s1, 4096, %s334_s12, [#allocation6], %s316_s0, %s316_s0, %s317_s3  }
  0x23   :  { %308 = dma.done.wait [#allocation3], 256  }
  0x24   :  { %309 = vsyncadd [#allocation3], 4294967040 }
  0x25   :  { %310 = dma.done.wait [#allocation6], 4096  }
  0x26   :  { %311 = vsyncadd [#allocation6], 4294963200  ;;  %v61_v0 = vld [vmem:[#allocation5 + $0x80] sm:$0xff]  ;;  %v62_v1 = vld [vmem:[#allocation5 + $0x88] sm:$0xff]  ;;  %s318_s1 = smov [#allocation7]  }
  0x27   :  { %v45_v2 = vld [vmem:[#allocation5] sm:$0xff]  ;;  %v203_v3 = vpack.c.bf16 %v62_v1, %v61_v0  ;;  %v46_v4 = vld [vmem:[#allocation5 + $0x8] sm:$0xff]  ;;  %v63_v5 = vld [vmem:[#allocation5 + $0x90] sm:$0xff]  ;;  %s158_s6 = sshll.u32 %s318_s1, 4  ;;  %s159_s6 = int_to_ptr.vmem [resolvable:$true] %s158_s6 }
  0x28   :  { %v64_v6 = vld [vmem:[#allocation5 + $0x98] sm:$0xff]  ;;  %v205_v7 = vpack.c.bf16 %v46_v4, %v45_v2  ;;  %v47_v9 = vld [vmem:[#allocation5 + $0x10] sm:$0xff]  ;;  %v65_v11 = vld [vmem:[#allocation5 + $0xa0] sm:$0xff]  ;;  %s286_s7 = scalar_lea.vmem %s159_s6, 128  ;;  %p291_p3 = scmp.lt.s32.totalorder %s159_s6, %s159_s6 }
  0x29   :  { %v207_v8 = vpack.c.bf16 %v64_v6, %v63_v5  ;;  %v48_v10 = vld [vmem:[#allocation5 + $0x18] sm:$0xff]  ;;  %204 = vmatprep.subr.bf16.mxu0 %v203_v3  ;;  %v66_v12 = vld [vmem:[#allocation5 + $0xa8] sm:$0xff]  ;;  %v49_v15 = vld [vmem:[#allocation5 + $0x20] sm:$0xff]  ;;  %p287_p2 = scmp.ne.s32.totalorder %s159_s6, %s286_s7  ;;  %p292_p4 = scmp.lt.s32.totalorder %s286_s7, %s286_s7 }
  0x2a   :  { %206 = vmatpush3.bf16.msra.mxu0 %v205_v7  ;;  %v209_v13 = vpack.c.bf16 %v48_v10, %v47_v9  ;;  %v211_v14 = vpack.c.bf16 %v66_v12, %v65_v11  ;;  %v50_v16 = vld [vmem:[#allocation5 + $0x28] sm:$0xff]  ;;  %v67_v17 = vld [vmem:[#allocation5 + $0xb0] sm:$0xff]  ;;  %v68_v18 = vld [vmem:[#allocation5 + $0xb8] sm:$0xff] }
  0x2b   :  { %208 = vmatprep.subr.bf16.mxu0 %v207_v8  ;;  %v213_v19 = vpack.c.bf16 %v50_v16, %v49_v15  ;;  %v215_v20 = vpack.c.bf16 %v68_v18, %v67_v17  ;;  %v51_v21 = vld [vmem:[#allocation5 + $0x30] sm:$0xff]  ;;  %v52_v22 = vld [vmem:[#allocation5 + $0x38] sm:$0xff]  ;;  %v69_v23 = vld [vmem:[#allocation5 + $0xc0] sm:$0xff]  ;;  %p293_p5 = por %p292_p4, %p291_p3 }
  0x2c   :  { %v70_v24 = vld [vmem:[#allocation5 + $0xc8] sm:$0xff]  ;;  %v39_v25 = vld [vmem:[#allocation2 + $0x8] sm:$0xff]  ;;  %v38_v27 = vld [vmem:[#allocation2] sm:$0xff]  ;;  %v217_v28 = vpack.c.bf16 %v52_v22, %v51_v21 }
  0x2d   :  { %v41_v26 = vmul.f32 %v39_v25, %v39_v25  ;;  %141 = vmatprep.mubr.f32.mxu0 %v39_v25  ;;  %v40_v29 = vmul.f32 %v38_v27, %v38_v27  ;;  %v219_v30 = vpack.c.bf16 %v70_v24, %v69_v23  ;;  %v53_v31 = vld [vmem:[#allocation5 + $0x40] sm:$0xff]  ;;  %v54_v32 = vld [vmem:[#allocation5 + $0x48] sm:$0xff]  ;;  %v71_v33 = vld [vmem:[#allocation5 + $0xd0] sm:$0xff]  ;;  %p294_p6 = pnand %p293_p5, %p287_p2 }
  0x2e   :  { %210 = vmatpush3.bf16.msra.mxu0 %v209_v13  ;;  %v72_v34 = vld [vmem:[#allocation5 + $0xd8] sm:$0xff]  ;;  %v221_v36 = vpack.c.bf16 %v54_v32, %v53_v31  ;;  %v55_v38 = vld [vmem:[#allocation5 + $0x50] sm:$0xff]  ;;  %v73_v40 = vld [vmem:[#allocation5 + $0xe0] sm:$0xff] }
  0x2f   :  { %212 = vmatprep.subr.bf16.mxu0 %v211_v14  ;;  %v42_v35 = vadd.f32 %v41_v26, %v40_v29  ;;  %v223_v37 = vpack.c.bf16 %v72_v34, %v71_v33  ;;  %v56_v39 = vld [vmem:[#allocation5 + $0x58] sm:$0xff]  ;;  %v74_v41 = vld [vmem:[#allocation5 + $0xe8] sm:$0xff]  ;;  %v57_v44 = vld [vmem:[#allocation5 + $0x60] sm:$0xff] }
  0x30   :  { %v225_v42 = vpack.c.bf16 %v56_v39, %v55_v38  ;;  %v227_v43 = vpack.c.bf16 %v74_v41, %v73_v40  ;;  %v58_v45 = vld [vmem:[#allocation5 + $0x68] sm:$0xff]  ;;  %v75_v46 = vld [vmem:[#allocation5 + $0xf0] sm:$0xff]  ;;  %v76_v47 = vld [vmem:[#allocation5 + $0xf8] sm:$0xff] }
  0x31   :  { %43 = vadd.xlane.f32.xlu0 %v42_v35  ;;  %v229_v48 = vpack.c.bf16 %v58_v45, %v57_v44  ;;  %v231_v49 = vpack.c.bf16 %v76_v47, %v75_v46  ;;  %v59_v50 = vld [vmem:[#allocation5 + $0x70] sm:$0xff]  ;;  %v60_v51 = vld [vmem:[#allocation5 + $0x78] sm:$0xff] }
  0x32   :  { %214 = vmatpush3.bf16.msra.mxu0 %v213_v19  ;;  %v233_v52 = vpack.c.bf16 %v60_v51, %v59_v50 }
  0x33   :  { %216 = vmatprep.subr.bf16.mxu0 %v215_v20 }
  0x36   :  { %218 = vmatpush3.bf16.msra.mxu0 %v217_v28 }
  0x37   :  { %220 = vmatprep.subr.bf16.mxu0 %v219_v30 }
  0x3a   :  { %222 = vmatpush3.bf16.msra.mxu0 %v221_v36 }
  0x3b   :  { %224 = vmatprep.subr.bf16.mxu0 %v223_v37 }
  0x3e   :  { %226 = vmatpush3.bf16.msra.mxu0 %v225_v42 }
  0x3f   :  { %228 = vmatprep.subr.bf16.mxu0 %v227_v43 }
  0x42   :  { %230 = vmatpush3.bf16.msra.mxu0 %v229_v48 }
  0x43   :  { %232 = vmatprep.subr.bf16.mxu0 %v231_v49 }
  0x46   :  { %234 = vmatpush3.bf16.msra.mxu0 %v233_v52 }
  0x49   :  { %142 = vmatmul.mubr.f32.vlgmr.msra.gmra.mrb[0].mxu0 %v38_v27 }
  0xbe   :  { %v44_v53 = vpop.xlane.xlu0 %43 }
  0xbf   :  { %v147_v54 = vmax.f32 %v44_v53, 1e-24 }
  0xc1   :  { %240 = vrsqrt.f32 %v147_v54 }
  0xcb   :  { %v241_v55 = vpop.eup %240 }
  0xcc   :  { %v149_v56 = vmul.f32 20.0, %v241_v55 }
 0x11c   :  { %v200_v57 = vpop.f32.mrb[0].mxu0 }
 0x11d   :  { %v201_v58 = vpop.f32.mrb[1].mxu0 }
 0x11e   :  { %v202_v59 = vadd.f32 %v201_v58, %v200_v57 }
 0x120   :  { %v150_v60 = vmul.f32 %v202_v59, %v149_v56 }
 0x122   :  { %151 = vst [vmem:[#allocation7] sm:$0xff] %v150_v60 }
 0x123   :  { %297 = shalt.err (!%p294_p6)
}
 0x124   :  { %s298_s10 = scalar_lea.hbm %s379_s2, 128 }
 0x125   :  { %p299_p7 = scmp.ne.s32.totalorder %s379_s2, %s298_s10  ;;  %p302_p8 = scmp.lt.u32.totalorder %s298_s10, %s379_s2 }
 0x127   :  { %p304_p9 = pnand %p302_p8, %p299_p7 }
 0x129   :  { %307 = shalt.err (!%p304_p9)
}
 0x12a   :  { %161 = dma.vmem_to_hbm [thread:$0]  %s159_s6, 128, %s379_s2, [#allocation4]  }
 0x12b   :  { %312 = dma.done.wait [#allocation4], 128  }
 0x12c   :  { %313 = vsyncadd [#allocation4], 4294967168 }
 0x12d   :  { %165 = vsyncpa [#allocation3], 1 }
 0x12e   :  { %166 = vsyncpa [#allocation6], 1 }
 0x12f   :  { %167 = vsyncpa [#allocation4], 1 }

</bundles_post_ra>
